<compile_context>
chip_gen: v7x
topology: tpu7x:2x2x1
jax: 0.10.0
libtpu: 0.0.40
codegen_flags: <defaults>
</compile_context>

<pallas_src>
import functools

import numpy as np

import jax
import jax.numpy as jnp
from jax.experimental import pallas as pl
from jax.experimental.pallas import tpu as pltpu


def calcs_kernel(slab_ref, out_ref, *, B, S):
    """Wavefront LCS DP over anti-diagonals.

    slab_ref layout (leading axis = wavefront step / selector index):
      slab_ref[d]        (B, W)  A_d  = act * p        for d in [0, ND)
      slab_ref[ND + d]   (B, W)  Bm_d = act * (1 - p)  for d in [0, ND)
      slab_ref[2*ND + t] (B, W)  msel_t[b, a] = (L[b] == t+1 and a == t+1)/L[b]
    out_ref : (1, 1) f32, mean CaLCS loss.
    """
    W = S + 1           # wavefront width, indexed by dp-row a = 0..S
    ND = 2 * S - 1      # number of wavefront steps (d = j + k)

    # Hoisted constants (JAX does not CSE broadcast_in_dim inside the
    # fully-unrolled loop).
    zcol = jnp.zeros((B, 1), jnp.float32)
    zeros = jnp.zeros((B, W), jnp.float32)

    def shift1(x):
        # x_sh[:, a] = x[:, a-1], x_sh[:, 0] = 0   (single lane shift)
        return jnp.concatenate([zcol, x[:, :W - 1]], axis=1)

    # prev1    = dp anti-diagonal m = d + 1  (prev1[a]    = dp[a][d+1-a])
    # prev2_sh = shift1(dp anti-diagonal m = d)
    #                                        (prev2_sh[a] = dp[a-1][d-(a-1)])
    prev1 = zeros
    prev2_sh = zeros
    acc = zeros         # running sum of msel * main-diagonal dp values

    for d in range(ND):
        a_d = slab_ref[d]            # act * p        on wavefront d
        b_d = slab_ref[ND + d]       # act * (1 - p)  on wavefront d
        prev1_sh = shift1(prev1)     # the only shift on the chain; reused below
        # new[a] = dp[a][d+2-a] (boundaries / inactive cells -> 0):
        #   dp[j+1][k+1] = p*(dp[j][k]+1) + (1-p)*max(dp[j+1][k], dp[j][k+1])
        new = a_d * (prev2_sh + 1.0) + b_d * jnp.maximum(prev1, prev1_sh)
        if d % 2 == 0:
            # dp[t][t] with t = d//2 + 1 lives at lane a = t of `new`; msel
            # picks it (and divides by L) only for rows with L == t.
            acc = acc + slab_ref[2 * ND + d // 2] * new
        prev2_sh = prev1_sh          # == shift1(prev2) of the next step
        prev1 = new

    final_over_L = jnp.sum(acc, axis=1, keepdims=True)        # (B, 1) dp[L][L]/L
    calcs = -jnp.log(final_over_L)                             # (B, 1)
    out_ref[...] = jnp.sum(calcs, axis=0, keepdims=True) * (1.0 / B)


@jax.jit
def _calcs_forward(topic_prob, hard_label):
    B, S, V = topic_prob.shape
    W = S + 1
    ND = 2 * S - 1

    tp = topic_prob.astype(jnp.float32)
    hl = hard_label.astype(jnp.int32)

    # per-example gts length
    L = jnp.sum((hl >= 0).astype(jnp.int32), axis=1)                 # (B,)

    # Static diagonal-major index tables: wavefront d = j + k, row a = j + 1.
    a_np = np.arange(W)[None, :]                                     # (1, W)
    d_np = np.arange(ND)[:, None]                                    # (ND, 1)
    j_np = np.broadcast_to(a_np - 1, (ND, W))                        # (ND, W)
    k_np = d_np - j_np                                               # (ND, W)
    valid_np = (j_np >= 0) & (j_np < S) & (k_np >= 0) & (k_np < S)
    j_c = np.clip(j_np, 0, S - 1)
    k_c = np.clip(k_np, 0, S - 1)

    # Single gather, directly in diagonal-major order:
    #   p_diag[b, d, a] = topic_prob[b, j, hard_label[b, k]], j = a-1, k = d-j
    hl_safe = jnp.clip(hl, 0, V - 1)                                 # (B, S)
    col = hl_safe[:, k_c.reshape(-1)]                                # (B, ND*W)
    flat_idx = jnp.asarray((j_c * V).reshape(-1), jnp.int32)[None, :] + col
    p_diag = jnp.take_along_axis(tp.reshape(B, S * V), flat_idx,
                                 axis=1).reshape(B, ND, W)           # (B, ND, W)

    active = (jnp.asarray(valid_np)[None, :, :]
              & (jnp.asarray(j_np)[None, :, :] < L[:, None, None])
              & (jnp.asarray(k_np)[None, :, :] < L[:, None, None])
              ).astype(jnp.float32)                                  # (B, ND, W)

    # Pre-fold the mask; wavefront index d becomes the LEADING axis.
    A = jnp.transpose(active * p_diag, (1, 0, 2))                    # (ND, B, W)
    Bm = jnp.transpose(active * (1.0 - p_diag), (1, 0, 2))           # (ND, B, W)

    # msel[t-1, b, a] = (L[b] == t and a == t) / L[b]: masked-accumulator
    # selector that picks dp[L][L]/L with one FMA per even wavefront step.
    # NOTE: if a row is all padding (L == 0) msel is all-zero there and the
    # result is -log(0) = inf, matching the (broken) torch reference behavior.
    # TODO(synk): guard L == 0 rows if real data can contain them.
    t_idx = jnp.arange(1, S + 1, dtype=jnp.int32)                    # (S,)
    a_idx = jnp.arange(W, dtype=jnp.int32)                           # (W,)
    inv_L = 1.0 / jnp.maximum(L, 1).astype(jnp.float32)              # (B,)
    msel = ((L[None, :, None] == t_idx[:, None, None])
            & (a_idx[None, None, :] == t_idx[:, None, None])
            ).astype(jnp.float32) * inv_L[None, :, None]             # (S, B, W)

    # One fused slab -> single input DMA for the latency-floor kernel.
    slab = jnp.concatenate([A, Bm, msel], axis=0)                    # (2ND+S,B,W)

    out = pl.pallas_call(
        functools.partial(calcs_kernel, B=B, S=S),
        out_shape=jax.ShapeDtypeStruct((1, 1), jnp.float32),
        in_specs=[pl.BlockSpec(memory_space=pltpu.MemorySpace.VMEM)],
        out_specs=pl.BlockSpec(memory_space=pltpu.MemorySpace.VMEM),
    )(slab)
    return out[0, 0]


def calcs_loss(topic_prob, hard_label, batch_size=20):
    """Forward pass of CaLCS. Returns (loss, {'CaLCS Loss': device scalar})."""
    assert topic_prob.shape[0] == batch_size, "module hardcodes batch_size"
    loss = _calcs_forward(topic_prob, hard_label)
    # The torch module returns loss.item() in the aux dict, forcing a host
    # sync every step; return the device scalar instead (largest end-to-end
    # lever per the perf review).  Callers can .item() lazily if they need a
    # Python float.
    return loss, {'CaLCS Loss': loss}


def _reference_numpy(tp, hl, batch_size):
    tp = np.asarray(tp, np.float64)
    hl = np.asarray(hl)
    B, S, _ = tp.shape
    gts_len = (hl >= 0).sum(axis=1)
    dp = np.zeros((batch_size, S + 1, S + 1), np.float64)
    calcs = np.zeros((batch_size,), np.float64)
    for i in range(batch_size):
        Li = int(gts_len[i])
        for j in range(Li):
            for k in range(Li):
                pjk = tp[i, j, int(hl[i, k])]
                dp[i, j + 1, k + 1] = pjk * (dp[i, j, k] + 1.0) + \
                    (1.0 - pjk) * max(dp[i, j + 1, k], dp[i, j, k + 1])
        calcs[i] = -np.log(dp[i, Li, Li] / Li)
    return calcs.sum() / batch_size


if __name__ == "__main__":
    B, S, V = 20, 8, 16   # batch_size=20 is hardcoded in the torch module
    key = jax.random.PRNGKey(0)
    k1, k2, k3 = jax.random.split(key, 3)

    logits = jax.random.normal(k1, (B, S, V), jnp.float32)
    topic_prob = jax.nn.softmax(logits, axis=-1)                 # probs in (0,1)

    labels = jax.random.randint(k2, (B, S), 0, V, dtype=jnp.int32)
    lengths = jax.random.randint(k3, (B,), 2, S + 1, dtype=jnp.int32)  # L in [2,S]
    pos = jnp.arange(S)[None, :]
    hard_label = jnp.where(pos < lengths[:, None], labels, -1)   # -1 padding

    loss, aux = calcs_loss(topic_prob, hard_label, batch_size=B)
    loss = jax.block_until_ready(loss)

    ref = _reference_numpy(np.array(topic_prob), np.array(hard_label), B)
    assert np.isfinite(float(loss))
    assert np.allclose(float(loss), ref, rtol=1e-3, atol=1e-3), (float(loss), ref)

    print("KERNEL_OK")
</pallas_src>

<mosaic_0001>
module attributes {stable_mosaic.version = 11 : i64} {
  func.func @calcs_kernel(%arg0: memref<38x20x9xf32, #tpu.memory_space<vmem>>, %arg1: memref<1x1xf32, #tpu.memory_space<vmem>>) attributes {dimension_semantics = [], scalar_prefetch = 0 : i64, scratch_operands = 0 : i64, tpu.core_type = #tpu.core_type<tc>} {
    %cst = arith.constant 0.000000e+00 : f32
    %0 = vector.broadcast %cst : f32 to vector<20x1xf32>
    %cst_0 = arith.constant 0.000000e+00 : f32
    %1 = vector.broadcast %cst_0 : f32 to vector<20x9xf32>
    %c0 = arith.constant 0 : index
    %c0_1 = arith.constant 0 : index
    %c0_2 = arith.constant 0 : index
    %2 = vector.load %arg0[%c0, %c0_1, %c0_2] : memref<38x20x9xf32, #tpu.memory_space<vmem>>, vector<1x20x9xf32>
    %3 = vector.shape_cast %2 : vector<1x20x9xf32> to vector<20x9xf32>
    %c15 = arith.constant 15 : index
    %c0_3 = arith.constant 0 : index
    %c0_4 = arith.constant 0 : index
    %4 = vector.load %arg0[%c15, %c0_3, %c0_4] : memref<38x20x9xf32, #tpu.memory_space<vmem>>, vector<1x20x9xf32>
    %5 = vector.shape_cast %4 : vector<1x20x9xf32> to vector<20x9xf32>
    %6 = vector.extract_strided_slice %1 {offsets = [0, 0], sizes = [20, 8], strides = [1, 1]} : vector<20x9xf32> to vector<20x8xf32>
    %7 = tpu.concatenate %0, %6 in 1 : vector<20x1xf32>, vector<20x8xf32> -> vector<20x9xf32>
    %cst_5 = arith.constant 1.000000e+00 : f32
    %8 = vector.broadcast %cst_5 : f32 to vector<20x9xf32>
    %9 = arith.addf %1, %8 : vector<20x9xf32>
    %10 = arith.mulf %3, %9 : vector<20x9xf32>
    %11 = arith.maximumf %1, %7 : vector<20x9xf32>
    %12 = arith.mulf %5, %11 : vector<20x9xf32>
    %13 = arith.addf %10, %12 : vector<20x9xf32>
    %c30 = arith.constant 30 : index
    %c0_6 = arith.constant 0 : index
    %c0_7 = arith.constant 0 : index
    %14 = vector.load %arg0[%c30, %c0_6, %c0_7] : memref<38x20x9xf32, #tpu.memory_space<vmem>>, vector<1x20x9xf32>
    %15 = vector.shape_cast %14 : vector<1x20x9xf32> to vector<20x9xf32>
    %16 = arith.mulf %15, %13 : vector<20x9xf32>
    %17 = arith.addf %1, %16 : vector<20x9xf32>
    %c1 = arith.constant 1 : index
    %c0_8 = arith.constant 0 : index
    %c0_9 = arith.constant 0 : index
    %18 = vector.load %arg0[%c1, %c0_8, %c0_9] : memref<38x20x9xf32, #tpu.memory_space<vmem>>, vector<1x20x9xf32>
    %19 = vector.shape_cast %18 : vector<1x20x9xf32> to vector<20x9xf32>
    %c16 = arith.constant 16 : index
    %c0_10 = arith.constant 0 : index
    %c0_11 = arith.constant 0 : index
    %20 = vector.load %arg0[%c16, %c0_10, %c0_11] : memref<38x20x9xf32, #tpu.memory_space<vmem>>, vector<1x20x9xf32>
    %21 = vector.shape_cast %20 : vector<1x20x9xf32> to vector<20x9xf32>
    %22 = vector.extract_strided_slice %13 {offsets = [0, 0], sizes = [20, 8], strides = [1, 1]} : vector<20x9xf32> to vector<20x8xf32>
    %23 = tpu.concatenate %0, %22 in 1 : vector<20x1xf32>, vector<20x8xf32> -> vector<20x9xf32>
    %cst_12 = arith.constant 1.000000e+00 : f32
    %24 = vector.broadcast %cst_12 : f32 to vector<20x9xf32>
    %25 = arith.addf %7, %24 : vector<20x9xf32>
    %26 = arith.mulf %19, %25 : vector<20x9xf32>
    %27 = arith.maximumf %13, %23 : vector<20x9xf32>
    %28 = arith.mulf %21, %27 : vector<20x9xf32>
    %29 = arith.addf %26, %28 : vector<20x9xf32>
    %c2 = arith.constant 2 : index
    %c0_13 = arith.constant 0 : index
    %c0_14 = arith.constant 0 : index
    %30 = vector.load %arg0[%c2, %c0_13, %c0_14] : memref<38x20x9xf32, #tpu.memory_space<vmem>>, vector<1x20x9xf32>
    %31 = vector.shape_cast %30 : vector<1x20x9xf32> to vector<20x9xf32>
    %c17 = arith.constant 17 : index
    %c0_15 = arith.constant 0 : index
    %c0_16 = arith.constant 0 : index
    %32 = vector.load %arg0[%c17, %c0_15, %c0_16] : memref<38x20x9xf32, #tpu.memory_space<vmem>>, vector<1x20x9xf32>
    %33 = vector.shape_cast %32 : vector<1x20x9xf32> to vector<20x9xf32>
    %34 = vector.extract_strided_slice %29 {offsets = [0, 0], sizes = [20, 8], strides = [1, 1]} : vector<20x9xf32> to vector<20x8xf32>
    %35 = tpu.concatenate %0, %34 in 1 : vector<20x1xf32>, vector<20x8xf32> -> vector<20x9xf32>
    %cst_17 = arith.constant 1.000000e+00 : f32
    %36 = vector.broadcast %cst_17 : f32 to vector<20x9xf32>
    %37 = arith.addf %23, %36 : vector<20x9xf32>
    %38 = arith.mulf %31, %37 : vector<20x9xf32>
    %39 = arith.maximumf %29, %35 : vector<20x9xf32>
    %40 = arith.mulf %33, %39 : vector<20x9xf32>
    %41 = arith.addf %38, %40 : vector<20x9xf32>
    %c31 = arith.constant 31 : index
    %c0_18 = arith.constant 0 : index
    %c0_19 = arith.constant 0 : index
    %42 = vector.load %arg0[%c31, %c0_18, %c0_19] : memref<38x20x9xf32, #tpu.memory_space<vmem>>, vector<1x20x9xf32>
    %43 = vector.shape_cast %42 : vector<1x20x9xf32> to vector<20x9xf32>
    %44 = arith.mulf %43, %41 : vector<20x9xf32>
    %45 = arith.addf %17, %44 : vector<20x9xf32>
    %c3 = arith.constant 3 : index
    %c0_20 = arith.constant 0 : index
    %c0_21 = arith.constant 0 : index
    %46 = vector.load %arg0[%c3, %c0_20, %c0_21] : memref<38x20x9xf32, #tpu.memory_space<vmem>>, vector<1x20x9xf32>
    %47 = vector.shape_cast %46 : vector<1x20x9xf32> to vector<20x9xf32>
    %c18 = arith.constant 18 : index
    %c0_22 = arith.constant 0 : index
    %c0_23 = arith.constant 0 : index
    %48 = vector.load %arg0[%c18, %c0_22, %c0_23] : memref<38x20x9xf32, #tpu.memory_space<vmem>>, vector<1x20x9xf32>
    %49 = vector.shape_cast %48 : vector<1x20x9xf32> to vector<20x9xf32>
    %50 = vector.extract_strided_slice %41 {offsets = [0, 0], sizes = [20, 8], strides = [1, 1]} : vector<20x9xf32> to vector<20x8xf32>
    %51 = tpu.concatenate %0, %50 in 1 : vector<20x1xf32>, vector<20x8xf32> -> vector<20x9xf32>
    %cst_24 = arith.constant 1.000000e+00 : f32
    %52 = vector.broadcast %cst_24 : f32 to vector<20x9xf32>
    %53 = arith.addf %35, %52 : vector<20x9xf32>
    %54 = arith.mulf %47, %53 : vector<20x9xf32>
    %55 = arith.maximumf %41, %51 : vector<20x9xf32>
    %56 = arith.mulf %49, %55 : vector<20x9xf32>
    %57 = arith.addf %54, %56 : vector<20x9xf32>
    %c4 = arith.constant 4 : index
    %c0_25 = arith.constant 0 : index
    %c0_26 = arith.constant 0 : index
    %58 = vector.load %arg0[%c4, %c0_25, %c0_26] : memref<38x20x9xf32, #tpu.memory_space<vmem>>, vector<1x20x9xf32>
    %59 = vector.shape_cast %58 : vector<1x20x9xf32> to vector<20x9xf32>
    %c19 = arith.constant 19 : index
    %c0_27 = arith.constant 0 : index
    %c0_28 = arith.constant 0 : index
    %60 = vector.load %arg0[%c19, %c0_27, %c0_28] : memref<38x20x9xf32, #tpu.memory_space<vmem>>, vector<1x20x9xf32>
    %61 = vector.shape_cast %60 : vector<1x20x9xf32> to vector<20x9xf32>
    %62 = vector.extract_strided_slice %57 {offsets = [0, 0], sizes = [20, 8], strides = [1, 1]} : vector<20x9xf32> to vector<20x8xf32>
    %63 = tpu.concatenate %0, %62 in 1 : vector<20x1xf32>, vector<20x8xf32> -> vector<20x9xf32>
    %cst_29 = arith.constant 1.000000e+00 : f32
    %64 = vector.broadcast %cst_29 : f32 to vector<20x9xf32>
    %65 = arith.addf %51, %64 : vector<20x9xf32>
    %66 = arith.mulf %59, %65 : vector<20x9xf32>
    %67 = arith.maximumf %57, %63 : vector<20x9xf32>
    %68 = arith.mulf %61, %67 : vector<20x9xf32>
    %69 = arith.addf %66, %68 : vector<20x9xf32>
    %c32 = arith.constant 32 : index
    %c0_30 = arith.constant 0 : index
    %c0_31 = arith.constant 0 : index
    %70 = vector.load %arg0[%c32, %c0_30, %c0_31] : memref<38x20x9xf32, #tpu.memory_space<vmem>>, vector<1x20x9xf32>
    %71 = vector.shape_cast %70 : vector<1x20x9xf32> to vector<20x9xf32>
    %72 = arith.mulf %71, %69 : vector<20x9xf32>
    %73 = arith.addf %45, %72 : vector<20x9xf32>
    %c5 = arith.constant 5 : index
    %c0_32 = arith.constant 0 : index
    %c0_33 = arith.constant 0 : index
    %74 = vector.load %arg0[%c5, %c0_32, %c0_33] : memref<38x20x9xf32, #tpu.memory_space<vmem>>, vector<1x20x9xf32>
    %75 = vector.shape_cast %74 : vector<1x20x9xf32> to vector<20x9xf32>
    %c20 = arith.constant 20 : index
    %c0_34 = arith.constant 0 : index
    %c0_35 = arith.constant 0 : index
    %76 = vector.load %arg0[%c20, %c0_34, %c0_35] : memref<38x20x9xf32, #tpu.memory_space<vmem>>, vector<1x20x9xf32>
    %77 = vector.shape_cast %76 : vector<1x20x9xf32> to vector<20x9xf32>
    %78 = vector.extract_strided_slice %69 {offsets = [0, 0], sizes = [20, 8], strides = [1, 1]} : vector<20x9xf32> to vector<20x8xf32>
    %79 = tpu.concatenate %0, %78 in 1 : vector<20x1xf32>, vector<20x8xf32> -> vector<20x9xf32>
    %cst_36 = arith.constant 1.000000e+00 : f32
    %80 = vector.broadcast %cst_36 : f32 to vector<20x9xf32>
    %81 = arith.addf %63, %80 : vector<20x9xf32>
    %82 = arith.mulf %75, %81 : vector<20x9xf32>
    %83 = arith.maximumf %69, %79 : vector<20x9xf32>
    %84 = arith.mulf %77, %83 : vector<20x9xf32>
    %85 = arith.addf %82, %84 : vector<20x9xf32>
    %c6 = arith.constant 6 : index
    %c0_37 = arith.constant 0 : index
    %c0_38 = arith.constant 0 : index
    %86 = vector.load %arg0[%c6, %c0_37, %c0_38] : memref<38x20x9xf32, #tpu.memory_space<vmem>>, vector<1x20x9xf32>
    %87 = vector.shape_cast %86 : vector<1x20x9xf32> to vector<20x9xf32>
    %c21 = arith.constant 21 : index
    %c0_39 = arith.constant 0 : index
    %c0_40 = arith.constant 0 : index
    %88 = vector.load %arg0[%c21, %c0_39, %c0_40] : memref<38x20x9xf32, #tpu.memory_space<vmem>>, vector<1x20x9xf32>
    %89 = vector.shape_cast %88 : vector<1x20x9xf32> to vector<20x9xf32>
    %90 = vector.extract_strided_slice %85 {offsets = [0, 0], sizes = [20, 8], strides = [1, 1]} : vector<20x9xf32> to vector<20x8xf32>
    %91 = tpu.concatenate %0, %90 in 1 : vector<20x1xf32>, vector<20x8xf32> -> vector<20x9xf32>
    %cst_41 = arith.constant 1.000000e+00 : f32
    %92 = vector.broadcast %cst_41 : f32 to vector<20x9xf32>
    %93 = arith.addf %79, %92 : vector<20x9xf32>
    %94 = arith.mulf %87, %93 : vector<20x9xf32>
    %95 = arith.maximumf %85, %91 : vector<20x9xf32>
    %96 = arith.mulf %89, %95 : vector<20x9xf32>
    %97 = arith.addf %94, %96 : vector<20x9xf32>
    %c33 = arith.constant 33 : index
    %c0_42 = arith.constant 0 : index
    %c0_43 = arith.constant 0 : index
    %98 = vector.load %arg0[%c33, %c0_42, %c0_43] : memref<38x20x9xf32, #tpu.memory_space<vmem>>, vector<1x20x9xf32>
    %99 = vector.shape_cast %98 : vector<1x20x9xf32> to vector<20x9xf32>
    %100 = arith.mulf %99, %97 : vector<20x9xf32>
    %101 = arith.addf %73, %100 : vector<20x9xf32>
    %c7 = arith.constant 7 : index
    %c0_44 = arith.constant 0 : index
    %c0_45 = arith.constant 0 : index
    %102 = vector.load %arg0[%c7, %c0_44, %c0_45] : memref<38x20x9xf32, #tpu.memory_space<vmem>>, vector<1x20x9xf32>
    %103 = vector.shape_cast %102 : vector<1x20x9xf32> to vector<20x9xf32>
    %c22 = arith.constant 22 : index
    %c0_46 = arith.constant 0 : index
    %c0_47 = arith.constant 0 : index
    %104 = vector.load %arg0[%c22, %c0_46, %c0_47] : memref<38x20x9xf32, #tpu.memory_space<vmem>>, vector<1x20x9xf32>
    %105 = vector.shape_cast %104 : vector<1x20x9xf32> to vector<20x9xf32>
    %106 = vector.extract_strided_slice %97 {offsets = [0, 0], sizes = [20, 8], strides = [1, 1]} : vector<20x9xf32> to vector<20x8xf32>
    %107 = tpu.concatenate %0, %106 in 1 : vector<20x1xf32>, vector<20x8xf32> -> vector<20x9xf32>
    %cst_48 = arith.constant 1.000000e+00 : f32
    %108 = vector.broadcast %cst_48 : f32 to vector<20x9xf32>
    %109 = arith.addf %91, %108 : vector<20x9xf32>
    %110 = arith.mulf %103, %109 : vector<20x9xf32>
    %111 = arith.maximumf %97, %107 : vector<20x9xf32>
    %112 = arith.mulf %105, %111 : vector<20x9xf32>
    %113 = arith.addf %110, %112 : vector<20x9xf32>
    %c8 = arith.constant 8 : index
    %c0_49 = arith.constant 0 : index
    %c0_50 = arith.constant 0 : index
    %114 = vector.load %arg0[%c8, %c0_49, %c0_50] : memref<38x20x9xf32, #tpu.memory_space<vmem>>, vector<1x20x9xf32>
    %115 = vector.shape_cast %114 : vector<1x20x9xf32> to vector<20x9xf32>
    %c23 = arith.constant 23 : index
    %c0_51 = arith.constant 0 : index
    %c0_52 = arith.constant 0 : index
    %116 = vector.load %arg0[%c23, %c0_51, %c0_52] : memref<38x20x9xf32, #tpu.memory_space<vmem>>, vector<1x20x9xf32>
    %117 = vector.shape_cast %116 : vector<1x20x9xf32> to vector<20x9xf32>
    %118 = vector.extract_strided_slice %113 {offsets = [0, 0], sizes = [20, 8], strides = [1, 1]} : vector<20x9xf32> to vector<20x8xf32>
    %119 = tpu.concatenate %0, %118 in 1 : vector<20x1xf32>, vector<20x8xf32> -> vector<20x9xf32>
    %cst_53 = arith.constant 1.000000e+00 : f32
    %120 = vector.broadcast %cst_53 : f32 to vector<20x9xf32>
    %121 = arith.addf %107, %120 : vector<20x9xf32>
    %122 = arith.mulf %115, %121 : vector<20x9xf32>
    %123 = arith.maximumf %113, %119 : vector<20x9xf32>
    %124 = arith.mulf %117, %123 : vector<20x9xf32>
    %125 = arith.addf %122, %124 : vector<20x9xf32>
    %c34 = arith.constant 34 : index
    %c0_54 = arith.constant 0 : index
    %c0_55 = arith.constant 0 : index
    %126 = vector.load %arg0[%c34, %c0_54, %c0_55] : memref<38x20x9xf32, #tpu.memory_space<vmem>>, vector<1x20x9xf32>
    %127 = vector.shape_cast %126 : vector<1x20x9xf32> to vector<20x9xf32>
    %128 = arith.mulf %127, %125 : vector<20x9xf32>
    %129 = arith.addf %101, %128 : vector<20x9xf32>
    %c9 = arith.constant 9 : index
    %c0_56 = arith.constant 0 : index
    %c0_57 = arith.constant 0 : index
    %130 = vector.load %arg0[%c9, %c0_56, %c0_57] : memref<38x20x9xf32, #tpu.memory_space<vmem>>, vector<1x20x9xf32>
    %131 = vector.shape_cast %130 : vector<1x20x9xf32> to vector<20x9xf32>
    %c24 = arith.constant 24 : index
    %c0_58 = arith.constant 0 : index
    %c0_59 = arith.constant 0 : index
    %132 = vector.load %arg0[%c24, %c0_58, %c0_59] : memref<38x20x9xf32, #tpu.memory_space<vmem>>, vector<1x20x9xf32>
    %133 = vector.shape_cast %132 : vector<1x20x9xf32> to vector<20x9xf32>
    %134 = vector.extract_strided_slice %125 {offsets = [0, 0], sizes = [20, 8], strides = [1, 1]} : vector<20x9xf32> to vector<20x8xf32>
    %135 = tpu.concatenate %0, %134 in 1 : vector<20x1xf32>, vector<20x8xf32> -> vector<20x9xf32>
    %cst_60 = arith.constant 1.000000e+00 : f32
    %136 = vector.broadcast %cst_60 : f32 to vector<20x9xf32>
    %137 = arith.addf %119, %136 : vector<20x9xf32>
    %138 = arith.mulf %131, %137 : vector<20x9xf32>
    %139 = arith.maximumf %125, %135 : vector<20x9xf32>
    %140 = arith.mulf %133, %139 : vector<20x9xf32>
    %141 = arith.addf %138, %140 : vector<20x9xf32>
    %c10 = arith.constant 10 : index
    %c0_61 = arith.constant 0 : index
    %c0_62 = arith.constant 0 : index
    %142 = vector.load %arg0[%c10, %c0_61, %c0_62] : memref<38x20x9xf32, #tpu.memory_space<vmem>>, vector<1x20x9xf32>
    %143 = vector.shape_cast %142 : vector<1x20x9xf32> to vector<20x9xf32>
    %c25 = arith.constant 25 : index
    %c0_63 = arith.constant 0 : index
    %c0_64 = arith.constant 0 : index
    %144 = vector.load %arg0[%c25, %c0_63, %c0_64] : memref<38x20x9xf32, #tpu.memory_space<vmem>>, vector<1x20x9xf32>
    %145 = vector.shape_cast %144 : vector<1x20x9xf32> to vector<20x9xf32>
    %146 = vector.extract_strided_slice %141 {offsets = [0, 0], sizes = [20, 8], strides = [1, 1]} : vector<20x9xf32> to vector<20x8xf32>
    %147 = tpu.concatenate %0, %146 in 1 : vector<20x1xf32>, vector<20x8xf32> -> vector<20x9xf32>
    %cst_65 = arith.constant 1.000000e+00 : f32
    %148 = vector.broadcast %cst_65 : f32 to vector<20x9xf32>
    %149 = arith.addf %135, %148 : vector<20x9xf32>
    %150 = arith.mulf %143, %149 : vector<20x9xf32>
    %151 = arith.maximumf %141, %147 : vector<20x9xf32>
    %152 = arith.mulf %145, %151 : vector<20x9xf32>
    %153 = arith.addf %150, %152 : vector<20x9xf32>
    %c35 = arith.constant 35 : index
    %c0_66 = arith.constant 0 : index
    %c0_67 = arith.constant 0 : index
    %154 = vector.load %arg0[%c35, %c0_66, %c0_67] : memref<38x20x9xf32, #tpu.memory_space<vmem>>, vector<1x20x9xf32>
    %155 = vector.shape_cast %154 : vector<1x20x9xf32> to vector<20x9xf32>
    %156 = arith.mulf %155, %153 : vector<20x9xf32>
    %157 = arith.addf %129, %156 : vector<20x9xf32>
    %c11 = arith.constant 11 : index
    %c0_68 = arith.constant 0 : index
    %c0_69 = arith.constant 0 : index
    %158 = vector.load %arg0[%c11, %c0_68, %c0_69] : memref<38x20x9xf32, #tpu.memory_space<vmem>>, vector<1x20x9xf32>
    %159 = vector.shape_cast %158 : vector<1x20x9xf32> to vector<20x9xf32>
    %c26 = arith.constant 26 : index
    %c0_70 = arith.constant 0 : index
    %c0_71 = arith.constant 0 : index
    %160 = vector.load %arg0[%c26, %c0_70, %c0_71] : memref<38x20x9xf32, #tpu.memory_space<vmem>>, vector<1x20x9xf32>
    %161 = vector.shape_cast %160 : vector<1x20x9xf32> to vector<20x9xf32>
    %162 = vector.extract_strided_slice %153 {offsets = [0, 0], sizes = [20, 8], strides = [1, 1]} : vector<20x9xf32> to vector<20x8xf32>
    %163 = tpu.concatenate %0, %162 in 1 : vector<20x1xf32>, vector<20x8xf32> -> vector<20x9xf32>
    %cst_72 = arith.constant 1.000000e+00 : f32
    %164 = vector.broadcast %cst_72 : f32 to vector<20x9xf32>
    %165 = arith.addf %147, %164 : vector<20x9xf32>
    %166 = arith.mulf %159, %165 : vector<20x9xf32>
    %167 = arith.maximumf %153, %163 : vector<20x9xf32>
    %168 = arith.mulf %161, %167 : vector<20x9xf32>
    %169 = arith.addf %166, %168 : vector<20x9xf32>
    %c12 = arith.constant 12 : index
    %c0_73 = arith.constant 0 : index
    %c0_74 = arith.constant 0 : index
    %170 = vector.load %arg0[%c12, %c0_73, %c0_74] : memref<38x20x9xf32, #tpu.memory_space<vmem>>, vector<1x20x9xf32>
    %171 = vector.shape_cast %170 : vector<1x20x9xf32> to vector<20x9xf32>
    %c27 = arith.constant 27 : index
    %c0_75 = arith.constant 0 : index
    %c0_76 = arith.constant 0 : index
    %172 = vector.load %arg0[%c27, %c0_75, %c0_76] : memref<38x20x9xf32, #tpu.memory_space<vmem>>, vector<1x20x9xf32>
    %173 = vector.shape_cast %172 : vector<1x20x9xf32> to vector<20x9xf32>
    %174 = vector.extract_strided_slice %169 {offsets = [0, 0], sizes = [20, 8], strides = [1, 1]} : vector<20x9xf32> to vector<20x8xf32>
    %175 = tpu.concatenate %0, %174 in 1 : vector<20x1xf32>, vector<20x8xf32> -> vector<20x9xf32>
    %cst_77 = arith.constant 1.000000e+00 : f32
    %176 = vector.broadcast %cst_77 : f32 to vector<20x9xf32>
    %177 = arith.addf %163, %176 : vector<20x9xf32>
    %178 = arith.mulf %171, %177 : vector<20x9xf32>
    %179 = arith.maximumf %169, %175 : vector<20x9xf32>
    %180 = arith.mulf %173, %179 : vector<20x9xf32>
    %181 = arith.addf %178, %180 : vector<20x9xf32>
    %c36 = arith.constant 36 : index
    %c0_78 = arith.constant 0 : index
    %c0_79 = arith.constant 0 : index
    %182 = vector.load %arg0[%c36, %c0_78, %c0_79] : memref<38x20x9xf32, #tpu.memory_space<vmem>>, vector<1x20x9xf32>
    %183 = vector.shape_cast %182 : vector<1x20x9xf32> to vector<20x9xf32>
    %184 = arith.mulf %183, %181 : vector<20x9xf32>
    %185 = arith.addf %157, %184 : vector<20x9xf32>
    %c13 = arith.constant 13 : index
    %c0_80 = arith.constant 0 : index
    %c0_81 = arith.constant 0 : index
    %186 = vector.load %arg0[%c13, %c0_80, %c0_81] : memref<38x20x9xf32, #tpu.memory_space<vmem>>, vector<1x20x9xf32>
    %187 = vector.shape_cast %186 : vector<1x20x9xf32> to vector<20x9xf32>
    %c28 = arith.constant 28 : index
    %c0_82 = arith.constant 0 : index
    %c0_83 = arith.constant 0 : index
    %188 = vector.load %arg0[%c28, %c0_82, %c0_83] : memref<38x20x9xf32, #tpu.memory_space<vmem>>, vector<1x20x9xf32>
    %189 = vector.shape_cast %188 : vector<1x20x9xf32> to vector<20x9xf32>
    %190 = vector.extract_strided_slice %181 {offsets = [0, 0], sizes = [20, 8], strides = [1, 1]} : vector<20x9xf32> to vector<20x8xf32>
    %191 = tpu.concatenate %0, %190 in 1 : vector<20x1xf32>, vector<20x8xf32> -> vector<20x9xf32>
    %cst_84 = arith.constant 1.000000e+00 : f32
    %192 = vector.broadcast %cst_84 : f32 to vector<20x9xf32>
    %193 = arith.addf %175, %192 : vector<20x9xf32>
    %194 = arith.mulf %187, %193 : vector<20x9xf32>
    %195 = arith.maximumf %181, %191 : vector<20x9xf32>
    %196 = arith.mulf %189, %195 : vector<20x9xf32>
    %197 = arith.addf %194, %196 : vector<20x9xf32>
    %c14 = arith.constant 14 : index
    %c0_85 = arith.constant 0 : index
    %c0_86 = arith.constant 0 : index
    %198 = vector.load %arg0[%c14, %c0_85, %c0_86] : memref<38x20x9xf32, #tpu.memory_space<vmem>>, vector<1x20x9xf32>
    %199 = vector.shape_cast %198 : vector<1x20x9xf32> to vector<20x9xf32>
    %c29 = arith.constant 29 : index
    %c0_87 = arith.constant 0 : index
    %c0_88 = arith.constant 0 : index
    %200 = vector.load %arg0[%c29, %c0_87, %c0_88] : memref<38x20x9xf32, #tpu.memory_space<vmem>>, vector<1x20x9xf32>
    %201 = vector.shape_cast %200 : vector<1x20x9xf32> to vector<20x9xf32>
    %202 = vector.extract_strided_slice %197 {offsets = [0, 0], sizes = [20, 8], strides = [1, 1]} : vector<20x9xf32> to vector<20x8xf32>
    %203 = tpu.concatenate %0, %202 in 1 : vector<20x1xf32>, vector<20x8xf32> -> vector<20x9xf32>
    %cst_89 = arith.constant 1.000000e+00 : f32
    %204 = vector.broadcast %cst_89 : f32 to vector<20x9xf32>
    %205 = arith.addf %191, %204 : vector<20x9xf32>
    %206 = arith.mulf %199, %205 : vector<20x9xf32>
    %207 = arith.maximumf %197, %203 : vector<20x9xf32>
    %208 = arith.mulf %201, %207 : vector<20x9xf32>
    %209 = arith.addf %206, %208 : vector<20x9xf32>
    %c37 = arith.constant 37 : index
    %c0_90 = arith.constant 0 : index
    %c0_91 = arith.constant 0 : index
    %210 = vector.load %arg0[%c37, %c0_90, %c0_91] : memref<38x20x9xf32, #tpu.memory_space<vmem>>, vector<1x20x9xf32>
    %211 = vector.shape_cast %210 : vector<1x20x9xf32> to vector<20x9xf32>
    %212 = arith.mulf %211, %209 : vector<20x9xf32>
    %213 = arith.addf %185, %212 : vector<20x9xf32>
    %cst_92 = arith.constant dense<0.000000e+00> : vector<20xf32>
    %214 = vector.multi_reduction <add>, %213, %cst_92 [1] : vector<20x9xf32> to vector<20xf32>
    %215 = vector.shape_cast %214 : vector<20xf32> to vector<20x1xf32>
    %216 = math.log %215 : vector<20x1xf32>
    %cst_93 = arith.constant 0.000000e+00 : f32
    %217 = vector.broadcast %cst_93 : f32 to vector<20x1xf32>
    %218 = arith.subf %217, %216 : vector<20x1xf32>
    %cst_94 = arith.constant dense<0.000000e+00> : vector<1xf32>
    %219 = vector.multi_reduction <add>, %218, %cst_94 [0] : vector<20x1xf32> to vector<1xf32>
    %220 = vector.shape_cast %219 : vector<1xf32> to vector<1x1xf32>
    %cst_95 = arith.constant 5.000000e-02 : f32
    %221 = vector.broadcast %cst_95 : f32 to vector<1x1xf32>
    %222 = arith.mulf %220, %221 : vector<1x1xf32>
    %c0_96 = arith.constant 0 : index
    %c0_97 = arith.constant 0 : index
    %223 = vector.load %arg1[%c0_96, %c0_97] : memref<1x1xf32, #tpu.memory_space<vmem>>, vector<1x1xf32>
    tpu.vector_store %arg1[%c0_96, %c0_97], %222 {strides = array<i32>} : memref<1x1xf32, #tpu.memory_space<vmem>>, vector<1x1xf32>,
    return
  }
}

</mosaic_0001>

<bundles_post_ra>
// kernel: _calcs_forward.1
= control target key start
LH: loop header
LB: loop body
LE: loop exit
PB: predicated region body
PF: predicated region fallthrough
CT: control target
= control target key end

     0   :  { %s819_s18 = smov 1   ;;  %s1394_s0 = inlined_call_operand.vmem [shape: f32[38,20,9], index: 0, kind: input, shape index: {}]   ;;  %s1395_s1 = inlined_call_operand.hbm [shape: f32[1,1], index: 1, kind: output, shape index: {}]  }
   0x1   :  { %v9_v0 = vld [vmem:[%s1394_s0] sm:$0xff]  ;;  %v676_v1 = vld [vmem:[%s1394_s0 + $0x168] sm:$0xff]  ;;  %v11_v3 = vld [vmem:[%s1394_s0 + $0x10] sm:$0xf] }
   0x2   :  { %v16_v2 = vmul.f32 0.0, %v676_v1  ;;  %v678_v4 = vld [vmem:[%s1394_s0 + $0x178] sm:$0xf]  ;;  %v10_v6 = vld [vmem:[%s1394_s0 + $0x8] sm:$0xff]  ;;  %v677_v7 = vld [vmem:[%s1394_s0 + $0x170] sm:$0xff] }
   0x3   :  { %v18_v5 = vmul.f32 0.0, %v678_v4  ;;  %v17_v9 = vmul.f32 0.0, %v677_v7 }
   0x4   :  { %v849_v8 = vadd.f32 %v16_v2, %v9_v0 }
   0x5   :  { %v851_v10 = vadd.f32 %v18_v5, %v11_v3  ;;  %v855_v11 = vadd.f32 %v17_v9, %v10_v6 }
   0x6   :  { %43 = vrot.lane.b32.xlu0 %v849_v8, %s819_s18 }
   0x7   :  { %47 = vrot.lane.b32.xlu1 %v851_v10, %s819_s18 }
   0x8   :  { %6 = vsyncpa [#allocation3], 0  ;;  %vm52_vm0 = vcmask 7168   ;;  %v685_v13 = vld [vmem:[%s1394_s0 + $0x180] sm:$0xff]  ;;  %v687_v17 = vld [vmem:[%s1394_s0 + $0x190] sm:$0xf] }
   0x9   :  { %v682_v20 = vld [vmem:[%s1394_s0 + $0x18] sm:$0xff]  ;;  %v686_v24 = vld [vmem:[%s1394_s0 + $0x188] sm:$0xff]  ;;  %v683_v29 = vld [vmem:[%s1394_s0 + $0x20] sm:$0xff]  ;;  %vm629_vm1 = vcmask 72704   ;;  %vm636_vm2 = vcmask 68608   ;;  %vm650_vm3 = vcmask 1043456  }
   0xa   :  { %45 = vrot.lane.b32.xlu0 %v855_v11, %s819_s18  ;;  %v684_v26 = vld [vmem:[%s1394_s0 + $0x28] sm:$0xf]  ;;  %v691_v35 = vld [vmem:[%s1394_s0 + $0x198] sm:$0xff]  ;;  %v688_v37 = vld [vmem:[%s1394_s0 + $0x30] sm:$0xff]  ;;  %vm660_vm4 = vcmask 0  }
   0xb   :  { %v690_v39 = vld [vmem:[%s1394_s0 + $0x40] sm:$0xf]  ;;  %v689_v46 = vld [vmem:[%s1394_s0 + $0x38] sm:$0xff]  ;;  %v693_v47 = vld [vmem:[%s1394_s0 + $0x1a8] sm:$0xf] }
   0xc   :  { %v692_v49 = vld [vmem:[%s1394_s0 + $0x1a0] sm:$0xff]  ;;  %v697_v62 = vld [vmem:[%s1394_s0 + $0x48] sm:$0xff]  ;;  %v700_v63 = vld [vmem:[%s1394_s0 + $0x1b0] sm:$0xff] }
   0xd   :  { %v698_v6 = vld [vmem:[%s1394_s0 + $0x50] sm:$0xff]  ;;  %v701_v9 = vld [vmem:[%s1394_s0 + $0x1b8] sm:$0xff] }
  0x78   :  { %v44_v12 = vpop.permute.xlu0 %43 }
  0x79   :  { %v53_v14 = vsel %vm52_vm0, 0.0, %v44_v12  ;;  %v48_v15 = vpop.permute.xlu1 %47 }
  0x7a   :  { %v56_v16 = vmax.f32 %v849_v8, %v53_v14  ;;  %v55_v18 = vsel %vm52_vm0, 0.0, %v48_v15  ;;  %v88_v34 = vadd.f32 1.0, %v53_v14  ;;  %v699_v14 = vld [vmem:[%s1394_s0 + $0x58] sm:$0xf] }
  0x7b   :  { %v58_v19 = vmax.f32 %v851_v10, %v55_v18  ;;  %v90_v40 = vadd.f32 1.0, %v55_v18 }
  0x7c   :  { %v59_v21 = vmul.f32 %v685_v13, %v56_v16  ;;  %v46_v22 = vpop.permute.xlu0 %45  ;;  %v91_v45 = vmul.f32 %v688_v37, %v88_v34  ;;  %v702_v16 = vld [vmem:[%s1394_s0 + $0x1c0] sm:$0xf] }
  0x7d   :  { %v61_v23 = vmul.f32 %v687_v17, %v58_v19  ;;  %v54_v25 = vsel %vm52_vm0, 0.0, %v46_v22  ;;  %v93_v54 = vmul.f32 %v690_v39, %v90_v40  ;;  %v707_v39 = vld [vmem:[%s1394_s0 + $0x1d0] sm:$0xff] }
  0x7e   :  { %v57_v27 = vmax.f32 %v855_v11, %v54_v25  ;;  %v62_v28 = vadd.f32 %v682_v20, %v59_v21  ;;  %v89_v41 = vadd.f32 1.0, %v54_v25 }
  0x7f   :  { %v64_v31 = vadd.f32 %v684_v26, %v61_v23 }
  0x80   :  { %v60_v30 = vmul.f32 %v686_v24, %v57_v27  ;;  %76 = vrot.lane.b32.xlu1 %v62_v28, %s819_s18  ;;  %v92_v55 = vmul.f32 %v689_v46, %v89_v41  ;;  %v705_v41 = vld [vmem:[%s1394_s0 + $0x70] sm:$0xf] }
  0x82   :  { %v63_v32 = vadd.f32 %v683_v29, %v60_v30  ;;  %v706_v29 = vld [vmem:[%s1394_s0 + $0x1c8] sm:$0xff] }
  0x84   :  { %80 = vrot.lane.b32.xlu1 %v64_v31, %s819_s18  ;;  %78 = vrot.lane.b32.xlu0 %v63_v32, %s819_s18 }
  0xf2   :  { %v77_v33 = vpop.permute.xlu1 %76 }
  0xf3   :  { %v85_v36 = vsel %vm52_vm0, 0.0, %v77_v33 }
  0xf4   :  { %v94_v38 = vmax.f32 %v62_v28, %v85_v36  ;;  %v136_v60 = vadd.f32 1.0, %v85_v36  ;;  %v703_v28 = vld [vmem:[%s1394_s0 + $0x60] sm:$0xff] }
  0xf6   :  { %v97_v42 = vmul.f32 %v691_v35, %v94_v38  ;;  %v81_v43 = vpop.permute.xlu1 %80  ;;  %v79_v44 = vpop.permute.xlu0 %78  ;;  %v139_v4 = vmul.f32 %v697_v62, %v136_v60  ;;  %v704_v35 = vld [vmem:[%s1394_s0 + $0x68] sm:$0xff] }
  0xf7   :  { %v87_v48 = vsel %vm52_vm0, 0.0, %v81_v43  ;;  %v86_v50 = vsel %vm52_vm0, 0.0, %v79_v44 }
  0xf8   :  { %v96_v51 = vmax.f32 %v64_v31, %v87_v48  ;;  %v95_v52 = vmax.f32 %v63_v32, %v86_v50  ;;  %v909_v53 = vadd.f32 %v97_v42, %v91_v45  ;;  %v137_v2 = vadd.f32 1.0, %v86_v50  ;;  %v708_v42 = vld [vmem:[%s1394_s0 + $0x1d8] sm:$0xf] }
  0xf9   :  { %v138_v5 = vadd.f32 1.0, %v87_v48 }
  0xfa   :  { %v99_v56 = vmul.f32 %v693_v47, %v96_v51  ;;  %v98_v57 = vmul.f32 %v692_v49, %v95_v52  ;;  %124 = vrot.lane.b32.xlu0 %v909_v53, %s819_s18  ;;  %v140_v20 = vmul.f32 %v698_v6, %v137_v2  ;;  %v713_v2 = vld [vmem:[%s1394_s0 + $0x80] sm:$0xff] }
  0xfb   :  { %v141_v22 = vmul.f32 %v699_v14, %v138_v5 }
  0xfc   :  { %v913_v58 = vadd.f32 %v99_v56, %v93_v54  ;;  %v915_v59 = vadd.f32 %v98_v57, %v92_v55  ;;  %v712_v56 = vld [vmem:[%s1394_s0 + $0x78] sm:$0xff]  ;;  %v715_v57 = vld [vmem:[%s1394_s0 + $0x1e0] sm:$0xff] }
  0xfe   :  { %126 = vrot.lane.b32.xlu1 %v915_v59, %s819_s18  ;;  %128 = vrot.lane.b32.xlu0 %v913_v58, %s819_s18 }
 0x16c   :  { %v125_v61 = vpop.permute.xlu0 %124 }
 0x16d   :  { %v133_v0 = vsel %vm52_vm0, 0.0, %v125_v61 }
 0x16e   :  { %v142_v1 = vmax.f32 %v909_v53, %v133_v0  ;;  %v174_v26 = vadd.f32 1.0, %v133_v0 }
 0x170   :  { %v127_v3 = vpop.permute.xlu1 %126  ;;  %v145_v7 = vmul.f32 %v700_v63, %v142_v1  ;;  %v129_v13 = vpop.permute.xlu0 %128  ;;  %v177_v34 = vmul.f32 %v703_v28, %v174_v26 }
 0x171   :  { %v134_v12 = vsel %vm52_vm0, 0.0, %v127_v3  ;;  %v135_v17 = vsel %vm52_vm0, 0.0, %v129_v13 }
 0x172   :  { %v143_v15 = vmax.f32 %v915_v59, %v134_v12  ;;  %v144_v18 = vmax.f32 %v913_v58, %v135_v17  ;;  %v148_v19 = vadd.f32 %v145_v7, %v139_v4  ;;  %v175_v32 = vadd.f32 1.0, %v134_v12  ;;  %v716_v4 = vld [vmem:[%s1394_s0 + $0x1e8] sm:$0xff]  ;;  %v717_v12 = vld [vmem:[%s1394_s0 + $0x1f0] sm:$0xf] }
 0x173   :  { %v176_v36 = vadd.f32 1.0, %v135_v17  ;;  %v714_v7 = vld [vmem:[%s1394_s0 + $0x88] sm:$0xf] }
 0x174   :  { %v146_v21 = vmul.f32 %v701_v9, %v143_v15  ;;  %v147_v23 = vmul.f32 %v702_v16, %v144_v18  ;;  %162 = vrot.lane.b32.xlu1 %v148_v19, %s819_s18  ;;  %v178_v47 = vmul.f32 %v704_v35, %v175_v32  ;;  %v722_v35 = vld [vmem:[%s1394_s0 + $0x200] sm:$0xff] }
 0x175   :  { %v179_v49 = vmul.f32 %v705_v41, %v176_v36 }
 0x176   :  { %v149_v24 = vadd.f32 %v146_v21, %v140_v20  ;;  %v150_v25 = vadd.f32 %v147_v23, %v141_v22 }
 0x178   :  { %164 = vrot.lane.b32.xlu0 %v149_v24, %s819_s18  ;;  %166 = vrot.lane.b32.xlu1 %v150_v25, %s819_s18 }
 0x1e6   :  { %v163_v27 = vpop.permute.xlu1 %162 }
 0x1e7   :  { %v171_v30 = vsel %vm52_vm0, 0.0, %v163_v27 }
 0x1e8   :  { %v180_v31 = vmax.f32 %v148_v19, %v171_v30  ;;  %v222_v54 = vadd.f32 1.0, %v171_v30 }
 0x1ea   :  { %v165_v33 = vpop.permute.xlu0 %164  ;;  %v183_v37 = vmul.f32 %v706_v29, %v180_v31  ;;  %v167_v38 = vpop.permute.xlu1 %166  ;;  %v225_v0 = vmul.f32 %v712_v56, %v222_v54  ;;  %v719_v31 = vld [vmem:[%s1394_s0 + $0x98] sm:$0xff]  ;;  %v730_v56 = vld [vmem:[%s1394_s0 + $0x210] sm:$0xff] }
 0x1eb   :  { %v172_v40 = vsel %vm52_vm0, 0.0, %v165_v33  ;;  %v173_v43 = vsel %vm52_vm0, 0.0, %v167_v38  ;;  %v723_v38 = vld [vmem:[%s1394_s0 + $0x208] sm:$0xf] }
 0x1ec   :  { %v181_v44 = vmax.f32 %v149_v24, %v172_v40  ;;  %v182_v45 = vmax.f32 %v150_v25, %v173_v43  ;;  %v969_v46 = vadd.f32 %v183_v37, %v177_v34  ;;  %v223_v62 = vadd.f32 1.0, %v172_v40  ;;  %v718_v24 = vld [vmem:[%s1394_s0 + $0x90] sm:$0xff]  ;;  %v721_v25 = vld [vmem:[%s1394_s0 + $0x1f8] sm:$0xff]  ;;  %v720_v37 = vld [vmem:[%s1394_s0 + $0xa0] sm:$0xf] }
 0x1ed   :  { %v224_v1 = vadd.f32 1.0, %v173_v43 }
 0x1ee   :  { %v184_v48 = vmul.f32 %v707_v39, %v181_v44  ;;  %v185_v50 = vmul.f32 %v708_v42, %v182_v45  ;;  %210 = vrot.lane.b32.xlu0 %v969_v46, %s819_s18  ;;  %v226_v16 = vmul.f32 %v713_v2, %v223_v62 }
 0x1ef   :  { %v227_v18 = vmul.f32 %v714_v7, %v224_v1  ;;  %v728_v1 = vld [vmem:[%s1394_s0 + $0xb0] sm:$0xff] }
 0x1f0   :  { %v973_v51 = vadd.f32 %v184_v48, %v178_v47  ;;  %v975_v52 = vadd.f32 %v185_v50, %v179_v49 }
 0x1f2   :  { %212 = vrot.lane.b32.xlu1 %v973_v51, %s819_s18  ;;  %214 = vrot.lane.b32.xlu0 %v975_v52, %s819_s18 }
 0x260   :  { %v211_v55 = vpop.permute.xlu0 %210 }
 0x261   :  { %v219_v60 = vsel %vm52_vm0, 0.0, %v211_v55  ;;  %v727_v55 = vld [vmem:[%s1394_s0 + $0xa8] sm:$0xff] }
 0x262   :  { %v228_v61 = vmax.f32 %v969_v46, %v219_v60  ;;  %v260_v22 = vadd.f32 1.0, %v219_v60 }
 0x264   :  { %v213_v63 = vpop.permute.xlu1 %212  ;;  %v231_v3 = vmul.f32 %v715_v57, %v228_v61  ;;  %v215_v6 = vpop.permute.xlu0 %214  ;;  %v263_v30 = vmul.f32 %v718_v24, %v260_v22  ;;  %v736_v24 = vld [vmem:[%s1394_s0 + $0x228] sm:$0xff] }
 0x265   :  { %v220_v5 = vsel %vm52_vm0, 0.0, %v213_v63  ;;  %v221_v13 = vsel %vm52_vm0, 0.0, %v215_v6  ;;  %v729_v6 = vld [vmem:[%s1394_s0 + $0xb8] sm:$0xf] }
 0x266   :  { %v229_v9 = vmax.f32 %v973_v51, %v220_v5  ;;  %v230_v14 = vmax.f32 %v975_v52, %v221_v13  ;;  %v234_v15 = vadd.f32 %v231_v3, %v225_v0  ;;  %v261_v28 = vadd.f32 1.0, %v220_v5  ;;  %v731_v3 = vld [vmem:[%s1394_s0 + $0x218] sm:$0xff] }
 0x267   :  { %v262_v32 = vadd.f32 1.0, %v221_v13 }
 0x268   :  { %v232_v17 = vmul.f32 %v716_v4, %v229_v9  ;;  %v233_v19 = vmul.f32 %v717_v12, %v230_v14  ;;  %248 = vrot.lane.b32.xlu1 %v234_v15, %s819_s18  ;;  %v264_v43 = vmul.f32 %v719_v31, %v261_v28  ;;  %v732_v9 = vld [vmem:[%s1394_s0 + $0x220] sm:$0xf] }
 0x269   :  { %v265_v45 = vmul.f32 %v720_v37, %v262_v32  ;;  %v738_v37 = vld [vmem:[%s1394_s0 + $0x238] sm:$0xf] }
 0x26a   :  { %v235_v20 = vadd.f32 %v232_v17, %v226_v16  ;;  %v236_v21 = vadd.f32 %v233_v19, %v227_v18 }
 0x26c   :  { %250 = vrot.lane.b32.xlu0 %v235_v20, %s819_s18  ;;  %252 = vrot.lane.b32.xlu1 %v236_v21, %s819_s18 }
 0x2da   :  { %v249_v23 = vpop.permute.xlu1 %248 }
 0x2db   :  { %v257_v26 = vsel %vm52_vm0, 0.0, %v249_v23  ;;  %v733_v23 = vld [vmem:[%s1394_s0 + $0xc0] sm:$0xff] }
 0x2dc   :  { %v266_v27 = vmax.f32 %v234_v15, %v257_v26  ;;  %v308_v50 = vadd.f32 1.0, %v257_v26 }
 0x2de   :  { %v251_v29 = vpop.permute.xlu0 %250  ;;  %v269_v33 = vmul.f32 %v721_v25, %v266_v27  ;;  %v253_v34 = vpop.permute.xlu1 %252  ;;  %v311_v63 = vmul.f32 %v727_v55, %v308_v50 }
 0x2df   :  { %v258_v36 = vsel %vm52_vm0, 0.0, %v251_v29  ;;  %v259_v39 = vsel %vm52_vm0, 0.0, %v253_v34  ;;  %v737_v34 = vld [vmem:[%s1394_s0 + $0x230] sm:$0xff] }
 0x2e0   :  { %v267_v40 = vmax.f32 %v235_v20, %v258_v36  ;;  %v268_v41 = vmax.f32 %v236_v21, %v259_v39  ;;  %v1029_v42 = vadd.f32 %v269_v33, %v263_v30  ;;  %v309_v61 = vadd.f32 1.0, %v258_v36  ;;  %v734_v30 = vld [vmem:[%s1394_s0 + $0xc8] sm:$0xff]  ;;  %v735_v36 = vld [vmem:[%s1394_s0 + $0xd0] sm:$0xf] }
 0x2e1   :  { %v310_v0 = vadd.f32 1.0, %v259_v39 }
 0x2e2   :  { %v270_v44 = vmul.f32 %v722_v35, %v267_v40  ;;  %v271_v47 = vmul.f32 %v723_v38, %v268_v41  ;;  %296 = vrot.lane.b32.xlu0 %v1029_v42, %s819_s18  ;;  %v312_v15 = vmul.f32 %v728_v1, %v309_v61 }
 0x2e3   :  { %v313_v17 = vmul.f32 %v729_v6, %v310_v0 }
 0x2e4   :  { %v1033_v48 = vadd.f32 %v270_v44, %v264_v43  ;;  %v1035_v49 = vadd.f32 %v271_v47, %v265_v45 }
 0x2e6   :  { %298 = vrot.lane.b32.xlu1 %v1033_v48, %s819_s18  ;;  %300 = vrot.lane.b32.xlu0 %v1035_v49, %s819_s18 }
 0x354   :  { %v297_v54 = vpop.permute.xlu0 %296 }
 0x355   :  { %v305_v57 = vsel %vm52_vm0, 0.0, %v297_v54 }
 0x356   :  { %v314_v60 = vmax.f32 %v1029_v42, %v305_v57  ;;  %v346_v21 = vadd.f32 1.0, %v305_v57  ;;  %v742_v57 = vld [vmem:[%s1394_s0 + $0xd8] sm:$0xff] }
 0x358   :  { %v299_v62 = vpop.permute.xlu1 %298  ;;  %v317_v2 = vmul.f32 %v730_v56, %v314_v60  ;;  %v301_v5 = vpop.permute.xlu0 %300  ;;  %v349_v29 = vmul.f32 %v733_v23, %v346_v21  ;;  %v745_v60 = vld [vmem:[%s1394_s0 + $0x240] sm:$0xff] }
 0x359   :  { %v306_v4 = vsel %vm52_vm0, 0.0, %v299_v62  ;;  %v307_v12 = vsel %vm52_vm0, 0.0, %v301_v5  ;;  %v746_v5 = vld [vmem:[%s1394_s0 + $0x248] sm:$0xff] }
 0x35a   :  { %v315_v7 = vmax.f32 %v1033_v48, %v306_v4  ;;  %v316_v13 = vmax.f32 %v1035_v49, %v307_v12  ;;  %v320_v14 = vadd.f32 %v317_v2, %v311_v63  ;;  %v347_v27 = vadd.f32 1.0, %v306_v4 }
 0x35b   :  { %v348_v31 = vadd.f32 1.0, %v307_v12 }
 0x35c   :  { %v318_v16 = vmul.f32 %v731_v3, %v315_v7  ;;  %v319_v18 = vmul.f32 %v732_v9, %v316_v13  ;;  %334 = vrot.lane.b32.xlu1 %v320_v14, %s819_s18  ;;  %v350_v43 = vmul.f32 %v734_v30, %v347_v27  ;;  %v743_v3 = vld [vmem:[%s1394_s0 + $0xe0] sm:$0xff]  ;;  %v744_v9 = vld [vmem:[%s1394_s0 + $0xe8] sm:$0xf]  ;;  %v747_v13 = vld [vmem:[%s1394_s0 + $0x250] sm:$0xf] }
 0x35d   :  { %v351_v45 = vmul.f32 %v735_v36, %v348_v31  ;;  %v752_v36 = vld [vmem:[%s1394_s0 + $0x260] sm:$0xff] }
 0x35e   :  { %v321_v19 = vadd.f32 %v318_v16, %v312_v15  ;;  %v322_v20 = vadd.f32 %v319_v18, %v313_v17 }
 0x360   :  { %336 = vrot.lane.b32.xlu0 %v321_v19, %s819_s18  ;;  %338 = vrot.lane.b32.xlu1 %v322_v20, %s819_s18 }
 0x3ce   :  { %v335_v22 = vpop.permute.xlu1 %334 }
 0x3cf   :  { %v343_v25 = vsel %vm52_vm0, 0.0, %v335_v22 }
 0x3d0   :  { %v352_v26 = vmax.f32 %v320_v14, %v343_v25  ;;  %v394_v55 = vadd.f32 1.0, %v343_v25  ;;  %v748_v25 = vld [vmem:[%s1394_s0 + $0xf0] sm:$0xff] }
 0x3d2   :  { %v337_v28 = vpop.permute.xlu0 %336  ;;  %v355_v32 = vmul.f32 %v736_v24, %v352_v26  ;;  %v339_v33 = vpop.permute.xlu1 %338  ;;  %v397_v1 = vmul.f32 %v742_v57, %v394_v55  ;;  %v751_v26 = vld [vmem:[%s1394_s0 + $0x258] sm:$0xff] }
 0x3d3   :  { %v344_v35 = vsel %vm52_vm0, 0.0, %v337_v28  ;;  %v345_v38 = vsel %vm52_vm0, 0.0, %v339_v33 }
 0x3d4   :  { %v353_v39 = vmax.f32 %v321_v19, %v344_v35  ;;  %v354_v40 = vmax.f32 %v322_v20, %v345_v38  ;;  %v1089_v41 = vadd.f32 %v355_v32, %v349_v29  ;;  %v395_v63 = vadd.f32 1.0, %v344_v35  ;;  %v749_v32 = vld [vmem:[%s1394_s0 + $0xf8] sm:$0xff] }
 0x3d5   :  { %v396_v2 = vadd.f32 1.0, %v345_v38  ;;  %v750_v38 = vld [vmem:[%s1394_s0 + $0x100] sm:$0xf] }
 0x3d6   :  { %v356_v44 = vmul.f32 %v737_v34, %v353_v39  ;;  %v357_v47 = vmul.f32 %v738_v37, %v354_v40  ;;  %382 = vrot.lane.b32.xlu0 %v1089_v41, %s819_s18  ;;  %v398_v17 = vmul.f32 %v743_v3, %v395_v63  ;;  %v753_v39 = vld [vmem:[%s1394_s0 + $0x268] sm:$0xf] }
 0x3d7   :  { %v399_v19 = vmul.f32 %v744_v9, %v396_v2  ;;  %v758_v9 = vld [vmem:[%s1394_s0 + $0x110] sm:$0xff] }
 0x3d8   :  { %v1093_v50 = vadd.f32 %v356_v44, %v350_v43  ;;  %v1095_v54 = vadd.f32 %v357_v47, %v351_v45 }
 0x3da   :  { %384 = vrot.lane.b32.xlu1 %v1093_v50, %s819_s18  ;;  %386 = vrot.lane.b32.xlu0 %v1095_v54, %s819_s18 }
 0x448   :  { %v383_v56 = vpop.permute.xlu0 %382 }
 0x449   :  { %v391_v61 = vsel %vm52_vm0, 0.0, %v383_v56 }
 0x44a   :  { %v400_v62 = vmax.f32 %v1089_v41, %v391_v61  ;;  %v432_v23 = vadd.f32 1.0, %v391_v61 }
 0x44c   :  { %v385_v0 = vpop.permute.xlu1 %384  ;;  %v403_v4 = vmul.f32 %v745_v60, %v400_v62  ;;  %v387_v7 = vpop.permute.xlu0 %386  ;;  %v435_v31 = vmul.f32 %v748_v25, %v432_v23 }
 0x44d   :  { %v392_v6 = vsel %vm52_vm0, 0.0, %v385_v0  ;;  %v393_v14 = vsel %vm52_vm0, 0.0, %v387_v7  ;;  %v757_v0 = vld [vmem:[%s1394_s0 + $0x108] sm:$0xff] }
 0x44e   :  { %v401_v12 = vmax.f32 %v1093_v50, %v392_v6  ;;  %v402_v15 = vmax.f32 %v1095_v54, %v393_v14  ;;  %v406_v16 = vadd.f32 %v403_v4, %v397_v1  ;;  %v433_v29 = vadd.f32 1.0, %v392_v6  ;;  %v760_v1 = vld [vmem:[%s1394_s0 + $0x270] sm:$0xff] }
 0x44f   :  { %v434_v33 = vadd.f32 1.0, %v393_v14 }
 0x450   :  { %v404_v18 = vmul.f32 %v746_v5, %v401_v12  ;;  %v405_v20 = vmul.f32 %v747_v13, %v402_v15  ;;  %420 = vrot.lane.b32.xlu1 %v406_v16, %s819_s18  ;;  %v436_v47 = vmul.f32 %v749_v32, %v433_v29  ;;  %v761_v13 = vld [vmem:[%s1394_s0 + $0x278] sm:$0xff] }
 0x451   :  { %v437_v56 = vmul.f32 %v750_v38, %v434_v33 }
 0x452   :  { %v407_v21 = vadd.f32 %v404_v18, %v398_v17  ;;  %v408_v22 = vadd.f32 %v405_v20, %v399_v19  ;;  %v762_v18 = vld [vmem:[%s1394_s0 + $0x280] sm:$0xf] }
 0x454   :  { %422 = vrot.lane.b32.xlu0 %v407_v21, %s819_s18  ;;  %424 = vrot.lane.b32.xlu1 %v408_v22, %s819_s18 }
 0x4c2   :  { %v421_v24 = vpop.permute.xlu1 %420 }
 0x4c3   :  { %v429_v27 = vsel %vm52_vm0, 0.0, %v421_v24 }
 0x4c4   :  { %v438_v28 = vmax.f32 %v406_v16, %v429_v27  ;;  %v480_v62 = vadd.f32 1.0, %v429_v27  ;;  %v759_v16 = vld [vmem:[%s1394_s0 + $0x118] sm:$0xf] }
 0x4c6   :  { %v423_v30 = vpop.permute.xlu0 %422  ;;  %v441_v34 = vmul.f32 %v751_v26, %v438_v28  ;;  %v425_v35 = vpop.permute.xlu1 %424  ;;  %v483_v6 = vmul.f32 %v757_v0, %v480_v62 }
 0x4c7   :  { %v430_v37 = vsel %vm52_vm0, 0.0, %v423_v30  ;;  %v431_v40 = vsel %vm52_vm0, 0.0, %v425_v35  ;;  %v763_v30 = vld [vmem:[%s1394_s0 + $0x120] sm:$0xff] }
 0x4c8   :  { %v439_v43 = vmax.f32 %v407_v21, %v430_v37  ;;  %v440_v44 = vmax.f32 %v408_v22, %v431_v40  ;;  %v1149_v45 = vadd.f32 %v441_v34, %v435_v31  ;;  %v481_v4 = vadd.f32 1.0, %v430_v37  ;;  %v766_v31 = vld [vmem:[%s1394_s0 + $0x288] sm:$0xff] }
 0x4c9   :  { %v482_v7 = vadd.f32 1.0, %v431_v40  ;;  %v764_v37 = vld [vmem:[%s1394_s0 + $0x128] sm:$0xff] }
 0x4ca   :  { %v442_v55 = vmul.f32 %v752_v36, %v439_v43  ;;  %v443_v57 = vmul.f32 %v753_v39, %v440_v44  ;;  %468 = vrot.lane.b32.xlu0 %v1149_v45, %s819_s18  ;;  %v484_v22 = vmul.f32 %v758_v9, %v481_v4  ;;  %v767_v43 = vld [vmem:[%s1394_s0 + $0x290] sm:$0xff]  ;;  %v772_v9 = vld [vmem:[%s1394_s0 + $0x138] sm:$0xff] }
 0x4cb   :  { %v485_v24 = vmul.f32 %v759_v16, %v482_v7 }
 0x4cc   :  { %v1153_v60 = vadd.f32 %v442_v55, %v436_v47  ;;  %v1155_v61 = vadd.f32 %v443_v57, %v437_v56  ;;  %v765_v47 = vld [vmem:[%s1394_s0 + $0x130] sm:$0xf]  ;;  %v768_v55 = vld [vmem:[%s1394_s0 + $0x298] sm:$0xf] }
 0x4ce   :  { %470 = vrot.lane.b32.xlu1 %v1153_v60, %s819_s18  ;;  %472 = vrot.lane.b32.xlu0 %v1155_v61, %s819_s18 }
 0x53c   :  { %v469_v63 = vpop.permute.xlu0 %468 }
 0x53d   :  { %v477_v2 = vsel %vm52_vm0, 0.0, %v469_v63 }
 0x53e   :  { %v486_v3 = vmax.f32 %v1149_v45, %v477_v2  ;;  %v518_v28 = vadd.f32 1.0, %v477_v2 }
 0x540   :  { %v471_v5 = vpop.permute.xlu1 %470  ;;  %v489_v12 = vmul.f32 %v760_v1, %v486_v3  ;;  %v473_v15 = vpop.permute.xlu0 %472  ;;  %v521_v36 = vmul.f32 %v763_v30, %v518_v28 }
 0x541   :  { %v478_v14 = vsel %vm52_vm0, 0.0, %v471_v5  ;;  %v479_v19 = vsel %vm52_vm0, 0.0, %v473_v15 }
 0x542   :  { %v487_v17 = vmax.f32 %v1153_v60, %v478_v14  ;;  %v488_v20 = vmax.f32 %v1155_v61, %v479_v19  ;;  %v492_v21 = vadd.f32 %v489_v12, %v483_v6  ;;  %v519_v34 = vadd.f32 1.0, %v478_v14  ;;  %v775_v12 = vld [vmem:[%s1394_s0 + $0x2a0] sm:$0xff] }
 0x543   :  { %v520_v38 = vadd.f32 1.0, %v479_v19  ;;  %v773_v19 = vld [vmem:[%s1394_s0 + $0x140] sm:$0xff] }
 0x544   :  { %v490_v23 = vmul.f32 %v761_v13, %v487_v17  ;;  %v491_v25 = vmul.f32 %v762_v18, %v488_v20  ;;  %506 = vrot.lane.b32.xlu1 %v492_v21, %s819_s18  ;;  %v522_v0 = vmul.f32 %v764_v37, %v519_v34  ;;  %v680_v37 = vld [vmem:[%s1394_s0 + $0x2d8] sm:$0xff] }
 0x545   :  { %v523_v2 = vmul.f32 %v765_v47, %v520_v38  ;;  %v694_v38 = vld [vmem:[%s1394_s0 + $0x2e8] sm:$0xff] }
 0x546   :  { %v493_v26 = vadd.f32 %v490_v23, %v484_v22  ;;  %v494_v27 = vadd.f32 %v491_v25, %v485_v24  ;;  %v774_v24 = vld [vmem:[%s1394_s0 + $0x148] sm:$0xf] }
 0x547   :  { %v710_v47 = vld [vmem:[%s1394_s0 + $0x308] sm:$0xff] }
 0x548   :  { %508 = vrot.lane.b32.xlu0 %v493_v26, %s819_s18  ;;  %510 = vrot.lane.b32.xlu1 %v494_v27, %s819_s18 }
 0x5b6   :  { %v507_v29 = vpop.permute.xlu1 %506 }
 0x5b7   :  { %v515_v32 = vsel %vm52_vm0, 0.0, %v507_v29 }
 0x5b8   :  { %v524_v33 = vmax.f32 %v492_v21, %v515_v32  ;;  %v566_v6 = vadd.f32 1.0, %v515_v32  ;;  %v776_v21 = vld [vmem:[%s1394_s0 + $0x2a8] sm:$0xff] }
 0x5ba   :  { %v509_v35 = vpop.permute.xlu0 %508  ;;  %v527_v39 = vmul.f32 %v766_v31, %v524_v33  ;;  %v511_v40 = vpop.permute.xlu1 %510  ;;  %v569_v17 = vmul.f32 %v772_v9, %v566_v6  ;;  %v740_v6 = vld [vmem:[%s1394_s0 + $0x338] sm:$0xff] }
 0x5bb   :  { %v516_v44 = vsel %vm52_vm0, 0.0, %v509_v35  ;;  %v517_v56 = vsel %vm52_vm0, 0.0, %v511_v40  ;;  %v681_v40 = vld [vmem:[%s1394_s0 + $0x2e0] sm:$0xf] }
 0x5bc   :  { %v525_v57 = vmax.f32 %v493_v26, %v516_v44  ;;  %v526_v62 = vmax.f32 %v494_v27, %v517_v56  ;;  %v1209_v63 = vadd.f32 %v527_v39, %v521_v36  ;;  %v567_v15 = vadd.f32 1.0, %v516_v44  ;;  %v777_v26 = vld [vmem:[%s1394_s0 + $0x2b0] sm:$0xf]  ;;  %v709_v44 = vld [vmem:[%s1394_s0 + $0x300] sm:$0xff] }
 0x5bd   :  { %v568_v18 = vadd.f32 1.0, %v517_v56  ;;  %v679_v36 = vld [vmem:[%s1394_s0 + $0x2d0] sm:$0xff]  ;;  %v27_v56 = vmul.f32 %v680_v37, %v855_v11  ;;  %v193_v11 = vmul.f32 %v709_v44, %v969_v46 }
 0x5be   :  { %v528_v1 = vmul.f32 %v767_v43, %v525_v57  ;;  %v529_v3 = vmul.f32 %v768_v55, %v526_v62  ;;  %554 = vrot.lane.b32.xlu0 %v1209_v63, %s819_s18  ;;  %v570_v30 = vmul.f32 %v773_v19, %v567_v15  ;;  %v695_v39 = vld [vmem:[%s1394_s0 + $0x2f0] sm:$0xff]  ;;  %v696_v43 = vld [vmem:[%s1394_s0 + $0x2f8] sm:$0xf]  ;;  %v26_v55 = vmul.f32 %v679_v36, %v849_v8  ;;  %v725_v8 = vld [vmem:[%s1394_s0 + $0x320] sm:$0xff] }
 0x5bf   :  { %v571_v32 = vmul.f32 %v774_v24, %v568_v18  ;;  %v107_v57 = vmul.f32 %v694_v38, %v909_v53  ;;  %v108_v62 = vmul.f32 %v695_v39, %v915_v59  ;;  %v194_v53 = vmul.f32 %v710_v47, %v973_v51  ;;  %v726_v59 = vld [vmem:[%s1394_s0 + $0x328] sm:$0xf]  ;;  %v741_v18 = vld [vmem:[%s1394_s0 + $0x340] sm:$0xf]  ;;  %v779_v38 = vld [vmem:[%s1394_s0 + $0x158] sm:$0xff] }
 0x5c0   :  { %v1213_v4 = vadd.f32 %v528_v1, %v522_v0  ;;  %v1215_v5 = vadd.f32 %v529_v3, %v523_v2  ;;  %v711_v0 = vld [vmem:[%s1394_s0 + $0x310] sm:$0xf]  ;;  %v28_v1 = vmul.f32 %v681_v40, %v851_v10  ;;  %v109_v2 = vmul.f32 %v696_v43, %v913_v58  ;;  %v724_v3 = vld [vmem:[%s1394_s0 + $0x318] sm:$0xff]  ;;  %v780_v47 = vld [vmem:[%s1394_s0 + $0x160] sm:$0xf] }
 0x5c1   :  { %v195_v10 = vmul.f32 %v711_v0, %v975_v52  ;;  %v739_v58 = vld [vmem:[%s1394_s0 + $0x330] sm:$0xff]  ;;  %v111_v9 = vadd.f32 %v108_v62, %v27_v56  ;;  %v279_v46 = vmul.f32 %v724_v3, %v1029_v42  ;;  %v280_v51 = vmul.f32 %v725_v8, %v1033_v48  ;;  %v754_v52 = vld [vmem:[%s1394_s0 + $0x348] sm:$0xff]  ;;  %v784_v62 = vld [vmem:[%s1394_s0 + $0x378] sm:$0xff] }
 0x5c2   :  { %556 = vrot.lane.b32.xlu1 %v1213_v4, %s819_s18  ;;  %558 = vrot.lane.b32.xlu0 %v1215_v5, %s819_s18  ;;  %v366_v19 = vmul.f32 %v740_v6, %v1093_v50  ;;  %v451_v50 = vmul.f32 %v754_v52, %v1149_v45  ;;  %v770_v45 = vld [vmem:[%s1394_s0 + $0x368] sm:$0xff]  ;;  %v771_v44 = vld [vmem:[%s1394_s0 + $0x370] sm:$0xf] }
 0x630   :  { %v555_v7 = vpop.permute.xlu0 %554 }
 0x631   :  { %v563_v13 = vsel %vm52_vm0, 0.0, %v555_v7  ;;  %v110_v7 = vadd.f32 %v107_v57, %v26_v55 }
 0x632   :  { %v572_v14 = vmax.f32 %v1209_v63, %v563_v13 }
 0x633   :  { %v196_v15 = vadd.f32 %v193_v11, %v110_v7  ;;  %v785_v7 = vld [vmem:[%s1394_s0 + $0x380] sm:$0xff] }
 0x634   :  { %v557_v16 = vpop.permute.xlu1 %556  ;;  %v575_v20 = vmul.f32 %v775_v12, %v572_v14  ;;  %v559_v23 = vpop.permute.xlu0 %558  ;;  %v112_v12 = vadd.f32 %v109_v2, %v28_v1  ;;  %v281_v14 = vmul.f32 %v726_v59, %v1035_v49  ;;  %v769_v49 = vld [vmem:[%s1394_s0 + $0x360] sm:$0xff] }
 0x635   :  { %v1236_v22 = vsel %vm52_vm0, 0.0, %v557_v16  ;;  %v1247_v27 = vsel %vm52_vm0, 0.0, %v559_v23  ;;  %v197_v16 = vadd.f32 %v194_v53, %v111_v9  ;;  %v282_v24 = vadd.f32 %v279_v46, %v196_v15 }
 0x636   :  { %v573_v25 = vmax.f32 %v1213_v4, %v1236_v22  ;;  %v574_v28 = vmax.f32 %v1215_v5, %v1247_v27  ;;  %v1251_v29 = vadd.f32 %v575_v20, %v569_v17  ;;  %v365_v17 = vmul.f32 %v739_v58, %v1089_v41  ;;  %v781_v41 = vld [vmem:[%s1394_s0 + $0x2b8] sm:$0xff] }
 0x637   :  { %v198_v42 = vadd.f32 %v195_v10, %v112_v12  ;;  %v604_v20 = vadd.f32 1.0, %v563_v13  ;;  %v367_v13 = vmul.f32 %v741_v18, %v1095_v54  ;;  %v537_v36 = vmul.f32 %v769_v49, %v1209_v63  ;;  %v756_v54 = vld [vmem:[%s1394_s0 + $0x358] sm:$0xf]  ;;  %v782_v63 = vld [vmem:[%s1394_s0 + $0x2c0] sm:$0xff] }
 0x638   :  { %v576_v31 = vmul.f32 %v776_v21, %v573_v25  ;;  %v577_v33 = vmul.f32 %v777_v26, %v574_v28  ;;  %592 = vrot.lane.b32.xlu1 %v1251_v29, %s819_s18  ;;  %v778_v21 = vld [vmem:[%s1394_s0 + $0x150] sm:$0xff]  ;;  %v283_v25 = vadd.f32 %v280_v51, %v197_v16  ;;  %v453_v8 = vmul.f32 %v756_v54, %v1155_v61  ;;  %v786_v61 = vld [vmem:[%s1394_s0 + $0x388] sm:$0xf] }
 0x639   :  { %v755_v28 = vld [vmem:[%s1394_s0 + $0x350] sm:$0xff]  ;;  %v538_v10 = vmul.f32 %v770_v45, %v1213_v4 }
 0x63a   :  { %v1255_v34 = vadd.f32 %v576_v31, %v570_v30  ;;  %v1257_v35 = vadd.f32 %v577_v33, %v571_v32  ;;  %v284_v30 = vadd.f32 %v281_v14, %v198_v42  ;;  %v605_v31 = vadd.f32 1.0, %v1236_v22 }
 0x63b   :  { %v368_v33 = vadd.f32 %v365_v17, %v282_v24  ;;  %v369_v37 = vadd.f32 %v366_v19, %v283_v25  ;;  %v606_v22 = vadd.f32 1.0, %v1247_v27  ;;  %v783_v27 = vld [vmem:[%s1394_s0 + $0x2c8] sm:$0xf]  ;;  %v452_v0 = vmul.f32 %v755_v28, %v1153_v60  ;;  %s820_s0 = smov [#allocation2]  }
 0x63c   :  { %594 = vrot.lane.b32.xlu0 %v1255_v34, %s819_s18  ;;  %596 = vrot.lane.b32.xlu1 %v1257_v35, %s819_s18  ;;  %v370_v3 = vadd.f32 %v367_v13, %v284_v30  ;;  %v608_v11 = vmul.f32 %v779_v38, %v605_v31  ;;  %v539_v60 = vmul.f32 %v771_v44, %v1215_v5  ;;  %s668_s8 = sshll.u32 %s820_s0, 4  ;;  %s669_s8 = int_to_ptr.vmem [resolvable:$true] %s668_s8 }
 0x63d   :  { %v454_v57 = vadd.f32 %v451_v50, %v368_v33  ;;  %v609_v58 = vmul.f32 %v780_v47, %v606_v22  ;;  %s795_s9 = scalar_lea.vmem %s669_s8, 16  ;;  %s799_s10 = scalar_lea.vmem %s669_s8, 32 }
 0x63e   :  { %v456_v12 = vadd.f32 %v453_v8, %v370_v3  ;;  %p796_p0 = scmp.ne.s32.totalorder %s669_s8, %s795_s9  ;;  %p800_p1 = scmp.lt.s32.totalorder %s669_s8, %s669_s8 }
 0x63f   :  { %v540_v59 = vadd.f32 %v537_v36, %v454_v57  ;;  %p801_p2 = scmp.lt.s32.totalorder %s799_s10, %s795_s9 }
 0x640   :  { %v542_v15 = vadd.f32 %v539_v60, %v456_v12 }
 0x641   :  { %p802_p3 = por %p801_p2, %p800_p1 }
 0x643   :  { %p803_p4 = pnand %p802_p3, %p796_p0 }
 0x6aa   :  { %v593_v48 = vpop.permute.xlu1 %592 }
 0x6ab   :  { %v601_v23 = vsel %vm52_vm0, 0.0, %v593_v48 }
 0x6ac   :  { %v610_v26 = vmax.f32 %v1251_v29, %v601_v23  ;;  %v607_v29 = vmul.f32 %v778_v21, %v604_v20 }
 0x6ae   :  { %v595_v32 = vpop.permute.xlu0 %594  ;;  %v613_v39 = vmul.f32 %v781_v41, %v610_v26  ;;  %v597_v40 = vpop.permute.xlu1 %596 }
 0x6af   :  { %v602_v43 = vsel %vm52_vm0, 0.0, %v595_v32  ;;  %v603_v55 = vsel %vm52_vm0, 0.0, %v597_v40 }
 0x6b0   :  { %v611_v56 = vmax.f32 %v1255_v34, %v602_v43  ;;  %v616_v1 = vadd.f32 %v613_v39, %v607_v29  ;;  %v612_v2 = vmax.f32 %v1257_v35, %v603_v55  ;;  %v455_v35 = vadd.f32 %v452_v0, %v369_v37 }
 0x6b2   :  { %v614_v53 = vmul.f32 %v782_v63, %v611_v56  ;;  %v615_v34 = vmul.f32 %v783_v27, %v612_v2  ;;  %v623_v6 = vmul.f32 %v784_v62, %v616_v1  ;;  %v541_v4 = vadd.f32 %v538_v10, %v455_v35 }
 0x6b4   :  { %v617_v9 = vadd.f32 %v614_v53, %v608_v11  ;;  %v618_v46 = vadd.f32 %v615_v34, %v609_v58  ;;  %v626_v51 = vadd.f32 %v623_v6, %v540_v59 }
 0x6b6   :  { %v624_v14 = vmul.f32 %v785_v7, %v617_v9  ;;  %v630_v52 = vsel %vm629_vm1, %v626_v51, 0.0  ;;  %v625_v16 = vmul.f32 %v786_v61, %v618_v46 }
 0x6b7   :  { %631 = vadd.xlane.f32.xlu0 %v630_v52 }
 0x6b8   :  { %v627_v17 = vadd.f32 %v624_v14, %v541_v4  ;;  %v628_v18 = vadd.f32 %v625_v16, %v542_v15 }
 0x6ba   :  { %v633_v5 = vsel %vm629_vm1, %v627_v17, 0.0  ;;  %v637_v19 = vsel %vm636_vm2, %v628_v18, 0.0 }
 0x6bb   :  { %634 = vadd.xlane.f32.xlu1 %v633_v5  ;;  %638 = vadd.xlane.f32.xlu0 %v637_v19 }
 0x744   :  { %v632_v42 = vpop.xlane.xlu0 %631 }
 0x745   :  { %789 = vlog2.f32 %v632_v42 }
 0x748   :  { %v635_v20 = vpop.xlane.xlu1 %634  ;;  %v639_v48 = vpop.xlane.xlu0 %638 }
 0x749   :  { %791 = vlog2.f32 %v635_v20 }
 0x74a   :  { %793 = vlog2.f32 %v639_v48 }
 0x74f   :  { %v790_v49 = vpop.eup %789 }
 0x750   :  { %v641_v21 = vmul.f32 0.6931472, %v790_v49 }
 0x752   :  { %v646_v25 = vsub.f32 0.0, %v641_v21 }
 0x753   :  { %v792_v41 = vpop.eup %791 }
 0x754   :  { %v794_v23 = vpop.eup %793  ;;  %v643_v24 = vmul.f32 0.6931472, %v792_v41 }
 0x755   :  { %v645_v50 = vmul.f32 0.6931472, %v794_v23 }
 0x756   :  { %v647_v13 = vsub.f32 0.0, %v643_v24 }
 0x757   :  { %v648_v26 = vsub.f32 0.0, %v645_v50 }
 0x758   :  { %v649_v28 = vadd.f32 %v647_v13, %v646_v25 }
 0x759   :  { %v651_v30 = vsel %vm650_vm3, %v648_v26, 0.0 }
 0x75a   :  { %v652_v31 = vadd.f32 %v651_v30, %v649_v28 }
 0x75c   :  { %v653_v32 = vrot.slane %v652_v31, 4 }
 0x75e   :  { %v654_v33 = vadd.f32 %v653_v32, %v652_v31 }
 0x760   :  { %v655_v36 = vrot.slane %v654_v33, 2 }
 0x762   :  { %v656_v37 = vadd.f32 %v655_v36, %v654_v33 }
 0x764   :  { %v657_v45 = vrot.slane %v656_v37, 1 }
 0x766   :  { %v658_v54 = vadd.f32 %v657_v45, %v656_v37 }
 0x768   :  { %v659_v29 = vmul.f32 0.05, %v658_v54 }
 0x76a   :  { %661 = vst.msk [vmem:[#allocation2] sm:$0x1] %vm660_vm4, %v659_v29 }
 0x76b   :  { %806 = shalt.err (!%p803_p4)
}
 0x76c   :  { %s807_s13 = scalar_lea.hbm %s1395_s1, 16 }
 0x76d   :  { %p808_p5 = scmp.ne.s32.totalorder %s1395_s1, %s807_s13  ;;  %p811_p6 = scmp.lt.u32.totalorder %s807_s13, %s1395_s1 }
 0x76f   :  { %p813_p7 = pnand %p811_p6, %p808_p5 }
 0x771   :  { %816 = shalt.err (!%p813_p7)
}
 0x772   :  { %671 = dma.vmem_to_hbm [thread:$0]  %s669_s8, 16, %s1395_s1, [#allocation3]  }
 0x773   :  { %817 = dma.done.wait [#allocation3], 16  }
 0x774   :  { %818 = vsyncadd [#allocation3], 4294967280 }
 0x775   :  { %675 = vsyncpa [#allocation3], 1 }

</bundles_post_ra>
